<compile_context>
chip_gen: v7x
topology: tpu7x:2x2x1
jax: 0.10.0
libtpu: 0.0.40
codegen_flags: <defaults>
</compile_context>

<pallas_src>
import functools

import jax
import jax.numpy as jnp
from jax.experimental import pallas as pl
from jax.experimental.pallas import tpu as pltpu


def _round_up(x, m):
    return ((x + m - 1) // m) * m


def _vmem_limit_bytes():
    """Per-generation VMEM budget: ~48 MiB on v7x (64 MiB physical per TC),
    ~96 MiB on v5e/v6e (128 MiB physical). Falls back to the v7x-safe value."""
    try:
        cap = pltpu.get_tpu_info().vmem_capacity_bytes
    except Exception:
        cap = 64 << 20
    return int(min(cap * 3 // 4, 100 << 20))


# --------------------------------------------------------------------------
# Kernels
# --------------------------------------------------------------------------
def _ridge_kernel_fast(x_ref, wt_ref, b_ref, o_ref, *, compute_dtype):
    """Single K tile + single O tile: y = x @ wt + b in one MXU pass."""
    x = x_ref[...]
    if compute_dtype is not None:
        x = x.astype(compute_dtype)          # in-kernel cast: no extra HBM pass over x
    acc = jnp.dot(x, wt_ref[...], preferred_element_type=jnp.float32)
    o_ref[...] = (acc + b_ref[...]).astype(o_ref.dtype)


def _ridge_kernel_reduce_f32(x_ref, wt_ref, b_ref, o_ref, *,
                             compute_dtype, d_total, tk, mask_k):
    """K-reduction path, f32 output: accumulate directly into the resident
    output block (no scratch, no finalize copy)."""
    k = pl.program_id(2)

    @pl.when(k == 0)
    def _():
        o_ref[...] = jnp.broadcast_to(b_ref[...], o_ref.shape)

    x = x_ref[...]
    if mask_k:
        # Last (partial) K block of the *unpadded* x may contain garbage
        # columns; mask them (jnp.where, not multiply, to avoid NaN*0).
        col = jax.lax.broadcasted_iota(jnp.int32, x.shape, 1) + k * tk
        x = jnp.where(col < d_total, x, jnp.zeros_like(x))
    if compute_dtype is not None:
        x = x.astype(compute_dtype)
    o_ref[...] += jnp.dot(x, wt_ref[...], preferred_element_type=jnp.float32)


def _ridge_kernel_reduce(x_ref, wt_ref, b_ref, o_ref, acc_ref, *,
                         compute_dtype, d_total, tk, mask_k):
    """K-reduction path for non-f32 outputs: f32 VMEM scratch accumulator."""
    k = pl.program_id(2)

    @pl.when(k == 0)
    def _():
        acc_ref[...] = jnp.zeros_like(acc_ref)

    x = x_ref[...]
    if mask_k:
        col = jax.lax.broadcasted_iota(jnp.int32, x.shape, 1) + k * tk
        x = jnp.where(col < d_total, x, jnp.zeros_like(x))
    if compute_dtype is not None:
        x = x.astype(compute_dtype)
    acc_ref[...] += jnp.dot(x, wt_ref[...], preferred_element_type=jnp.float32)

    @pl.when(k == pl.num_programs(2) - 1)
    def _():
        o_ref[...] = (acc_ref[...] + b_ref[...]).astype(o_ref.dtype)


# --------------------------------------------------------------------------
# Wrapper
# --------------------------------------------------------------------------
def prepare_ridge_params(weight, fit_intercept=True):
    """Hoist the weight slice + transpose out of the hot forward path.

    weight: (out_features, in_features + fit_intercept), PyTorch Linear layout.
    Returns (wt, bias): wt (in_features, out_features), bias (out_features,) f32.
    """
    weight = jnp.asarray(weight)
    if fit_intercept:
        bias = weight[:, 0].astype(jnp.float32)
        w = weight[:, 1:]
    else:
        bias = jnp.zeros((weight.shape[0],), jnp.float32)
        w = weight
    return w.T, bias


def ridge_forward(x, wt, bias, *, compute_dtype=None,
                  tm_max=512, tn_max=512, tk_max=1024, force_path=None):
    """y = x @ wt + bias via a tiled Pallas matmul.

    x   : (N, D)
    wt  : (D, O)    (= W[:, 1:].T)
    bias: (O,)      f32 intercept
    compute_dtype: optional MXU operand dtype (bf16 pays off on v5e/v6e/v7x;
                   accumulation and bias add always stay f32).
    """
    N, D = x.shape
    D_w, O = wt.shape
    assert D_w == D, (D_w, D)
    out_dtype = x.dtype

    comp = None if compute_dtype is None else jnp.dtype(compute_dtype)
    sub = 16 if comp == jnp.dtype(jnp.bfloat16) else 8

    # wt / bias are tiny vs x: pad & pre-cast them in the wrapper; NEVER pad x.
    if comp is not None:
        wt = wt.astype(comp)

    vmem_limit = _vmem_limit_bytes()

    # ---- N tiling ---------------------------------------------------------
    if N <= tm_max:
        tm = N                                 # full-dim block: legal for any N
    else:
        tm = (tm_max // sub) * sub             # partial edge block handles N % tm
    grid_m = pl.cdiv(N, tm)
    # v7x: 2 TensorCores are sharded over "parallel" axes -> give both work.
    if grid_m < 2 and N >= 256:
        tm = _round_up((N + 1) // 2, sub)
        grid_m = pl.cdiv(N, tm)

    o_pad = _round_up(O, 128)                  # lane-dense (unmasked vst) writeback
    x_isz = x.dtype.itemsize
    w_isz = wt.dtype.itemsize
    o_isz = jnp.dtype(out_dtype).itemsize

    cost = pl.CostEstimate(
        flops=2 * N * D * o_pad,
        transcendentals=0,
        bytes_accessed=(N * D * x_isz + D * o_pad * w_isz
                        + o_pad * 4 + N * o_pad * o_isz),
    )

    # Fast path: whole O + whole K in one tile -> wt/bias VMEM-resident,
    # x and out each DMA'd exactly once.
    fast_bytes = (2 * D * o_pad * w_isz        # wt (conservatively double-buffered)
                  + 2 * tm * D * x_isz         # x tiles
                  + 2 * tm * o_pad * o_isz     # out tiles
                  + 2 * o_pad * 4)             # bias
    use_fast = fast_bytes <= int(vmem_limit * 0.8)
    if force_path == "fast":
        use_fast = True
    elif force_path == "reduce":
        use_fast = False

    if use_fast:
        wt_p = jnp.pad(wt, ((0, 0), (0, o_pad - O)))
        bias_p = jnp.pad(bias.astype(jnp.float32), (0, o_pad - O))[None, :]
        out = pl.pallas_call(
            functools.partial(_ridge_kernel_fast, compute_dtype=comp),
            out_shape=jax.ShapeDtypeStruct((N, o_pad), out_dtype),
            grid_spec=pltpu.PrefetchScalarGridSpec(
                num_scalar_prefetch=0,
                grid=(grid_m,),
                in_specs=[
                    pl.BlockSpec((tm, D), lambda i: (i, 0)),
                    pl.BlockSpec((D, o_pad), lambda i: (0, 0)),
                    pl.BlockSpec((1, o_pad), lambda i: (0, 0)),
                ],
                out_specs=pl.BlockSpec((tm, o_pad), lambda i: (i, 0)),
            ),
            compiler_params=pltpu.CompilerParams(
                dimension_semantics=("parallel",),
                vmem_limit_bytes=vmem_limit,
            ),
            cost_estimate=cost,
        )(x, wt_p, bias_p)
        return out[:, :O]

    # ---- general reduce path (large D and/or large O) ----------------------
    tn = min((tn_max // 128) * 128, o_pad)
    o_pad = _round_up(O, tn)
    tk = min((tk_max // 128) * 128, _round_up(D, 128))
    d_pad = _round_up(D, tk)
    grid_k = d_pad // tk
    mask_k = (D % tk) != 0

    # Only the small wt/bias are padded; x is read unpadded (K edge masked).
    wt_p = jnp.pad(wt, ((0, d_pad - D), (0, o_pad - O)))
    bias_p = jnp.pad(bias.astype(jnp.float32), (0, o_pad - O))[None, :]

    common = dict(compute_dtype=comp, d_total=D, tk=tk, mask_k=mask_k)
    if jnp.dtype(out_dtype) == jnp.dtype(jnp.float32):
        kernel = functools.partial(_ridge_kernel_reduce_f32, **common)
        scratch = []                           # accumulate straight into o_ref
    else:
        kernel = functools.partial(_ridge_kernel_reduce, **common)
        scratch = [pltpu.VMEM((tm, tn), jnp.float32)]

    out = pl.pallas_call(
        kernel,
        out_shape=jax.ShapeDtypeStruct((N, o_pad), out_dtype),
        grid_spec=pltpu.PrefetchScalarGridSpec(
            num_scalar_prefetch=0,
            grid=(grid_m, o_pad // tn, grid_k),
            in_specs=[
                pl.BlockSpec((tm, tk), lambda i, j, k: (i, k)),
                pl.BlockSpec((tk, tn), lambda i, j, k: (k, j)),
                pl.BlockSpec((1, tn), lambda i, j, k: (0, j)),
            ],
            out_specs=pl.BlockSpec((tm, tn), lambda i, j, k: (i, j)),
            scratch_shapes=scratch,
        ),
        compiler_params=pltpu.CompilerParams(
            dimension_semantics=("parallel", "parallel", "arbitrary"),
            vmem_limit_bytes=vmem_limit,
        ),
        cost_estimate=cost,
    )(x, wt_p, bias_p)
    return out[:, :O]


# --------------------------------------------------------------------------
# Self-test
# --------------------------------------------------------------------------
if __name__ == "__main__":
    key = jax.random.PRNGKey(0)
    k1, k2, k3, k4 = jax.random.split(key, 4)

    # ---- Case 1: small classifier (fast, wt-resident path), f32 & bf16 ----
    N, in_features, out_features = 8, 32, 16
    x = jax.random.normal(k1, (N, in_features), dtype=jnp.float32)
    weight = jax.random.normal(
        k2, (out_features, in_features + 1), dtype=jnp.float32) * 0.1

    x_aug = jnp.concatenate([jnp.ones((N, 1), x.dtype), x], axis=1)
    y_ref = jnp.dot(x_aug, weight.T, precision=jax.lax.Precision.HIGHEST)

    wt, bias = prepare_ridge_params(weight, fit_intercept=True)

    y = jax.block_until_ready(ridge_forward(x, wt, bias))
    assert y.shape == (N, out_features)
    assert jnp.allclose(y, y_ref, atol=5e-3, rtol=5e-3)

    y_bf = jax.block_until_ready(
        ridge_forward(x, wt, bias, compute_dtype=jnp.bfloat16))
    assert y_bf.shape == (N, out_features)
    assert jnp.allclose(y_bf.astype(jnp.float32), y_ref, atol=3e-2, rtol=3e-2)

    # ---- Case 2: forced reduce path with a partial (masked) K tile --------
    N2, D2, O2 = 16, 200, 10
    x2 = jax.random.normal(k3, (N2, D2), dtype=jnp.float32)
    w2 = jax.random.normal(k4, (O2, D2 + 1), dtype=jnp.float32) * 0.05
    x2_aug = jnp.concatenate([jnp.ones((N2, 1), x2.dtype), x2], axis=1)
    y2_ref = jnp.dot(x2_aug, w2.T, precision=jax.lax.Precision.HIGHEST)

    wt2, bias2 = prepare_ridge_params(w2, fit_intercept=True)
    y2 = jax.block_until_ready(
        ridge_forward(x2, wt2, bias2, tk_max=128, force_path="reduce"))
    assert y2.shape == (N2, O2)
    assert jnp.allclose(y2, y2_ref, atol=1e-2, rtol=1e-2)

    print("KERNEL_OK")
</pallas_src>

<mosaic_0001>
module attributes {stable_mosaic.version = 11 : i64} {
  func.func @_ridge_kernel_fast(%arg0: i32, %arg1: memref<8x32xf32, #tpu.memory_space<vmem>>, %arg2: memref<32x128xf32, #tpu.memory_space<vmem>>, %arg3: memref<1x128xf32, #tpu.memory_space<vmem>>, %arg4: memref<8x128xf32, #tpu.memory_space<vmem>>) attributes {dimension_semantics = [#tpu.dimension_semantics<parallel>], iteration_bounds = array<i64: 1>, scalar_prefetch = 0 : i64, scratch_operands = 0 : i64, tpu.core_type = #tpu.core_type<tc>, window_params = [{transform_indices = @transform_0, window_bounds = array<i64: 8, 32>}, {pipeline_mode = #tpu.pipeline_mode<synchronous>, transform_indices = @transform_1, window_bounds = array<i64: 32, 128>}, {pipeline_mode = #tpu.pipeline_mode<synchronous>, transform_indices = @transform_2, window_bounds = array<i64: 1, 128>}, {transform_indices = @transform_3, window_bounds = array<i64: 8, 128>}]} {
    %c0 = arith.constant 0 : index
    %c0_0 = arith.constant 0 : index
    %0 = vector.load %arg1[%c0, %c0_0] : memref<8x32xf32, #tpu.memory_space<vmem>>, vector<8x32xf32>
    %c0_1 = arith.constant 0 : index
    %c0_2 = arith.constant 0 : index
    %1 = vector.load %arg2[%c0_1, %c0_2] : memref<32x128xf32, #tpu.memory_space<vmem>>, vector<32x128xf32>
    %cst = arith.constant dense<0.000000e+00> : vector<8x128xf32>
    %2 = tpu.matmul %0, %1, %cst {dimension_numbers = #tpu.dot_dimension_numbers<[1], [0], [0], [1], [0, 0, 1, 1], [], []>} : vector<8x32xf32>, vector<32x128xf32>, vector<8x128xf32> -> vector<8x128xf32>
    %c0_3 = arith.constant 0 : index
    %c0_4 = arith.constant 0 : index
    %3 = vector.load %arg3[%c0_3, %c0_4] : memref<1x128xf32, #tpu.memory_space<vmem>>, vector<1x128xf32>
    %4 = vector.broadcast %3 : vector<1x128xf32> to vector<8x128xf32>
    %5 = arith.addf %2, %4 : vector<8x128xf32>
    %c0_5 = arith.constant 0 : index
    %c0_6 = arith.constant 0 : index
    %6 = vector.load %arg4[%c0_5, %c0_6] : memref<8x128xf32, #tpu.memory_space<vmem>>, vector<8x128xf32>
    tpu.vector_store %arg4[%c0_5, %c0_6], %5 {strides = array<i32>} : memref<8x128xf32, #tpu.memory_space<vmem>>, vector<8x128xf32>,
    return
  }
  func.func @transform_0(%arg0: i32) -> (i32, i32) {
    %c0_i32 = arith.constant 0 : i32
    %c0_i32_0 = arith.constant 0 : i32
    return %arg0, %c0_i32 : i32, i32
  }
  func.func @transform_1(%arg0: i32) -> (i32, i32) {
    %c0_i32 = arith.constant 0 : i32
    %c0_i32_0 = arith.constant 0 : i32
    %c0_i32_1 = arith.constant 0 : i32
    return %c0_i32, %c0_i32_0 : i32, i32
  }
  func.func @transform_2(%arg0: i32) -> (i32, i32) {
    %c0_i32 = arith.constant 0 : i32
    %c0_i32_0 = arith.constant 0 : i32
    %c0_i32_1 = arith.constant 0 : i32
    return %c0_i32, %c0_i32_0 : i32, i32
  }
  func.func @transform_3(%arg0: i32) -> (i32, i32) {
    %c0_i32 = arith.constant 0 : i32
    %c0_i32_0 = arith.constant 0 : i32
    return %arg0, %c0_i32 : i32, i32
  }
}

</mosaic_0001>

<bundles_post_ra>
// kernel: tpu_custom_call.1
= control target key start
LH: loop header
LB: loop body
LE: loop exit
PB: predicated region body
PF: predicated region fallthrough
CT: control target
= control target key end

     0   :  { %8 = vsyncpa [#allocation3], 0  ;;  %s322_s0 = inlined_call_operand.hbm [shape: f32[8,32], index: 0, kind: input, shape index: {}]   ;;  %s323_s1 = inlined_call_operand.hbm [shape: f32[32,128], index: 1, kind: input, shape index: {}]   ;;  %s324_s2 = inlined_call_operand.vmem [shape: f32[1,128], index: 2, kind: input, shape index: {}]   ;;  %s325_s3 = inlined_call_operand.hbm [shape: f32[8,128], index: 3, kind: output, shape index: {}]  }
   0x1   :  { %9 = vsyncpa [#allocation6], 0 }
   0x2   :  { %10 = vsyncpa [#allocation4], 0  ;;  %s248_s12 = smov [#allocation2]   ;;  %s249_s14 = smov [#allocation5]  }
   0x3   :  { %s17_s13 = sshll.u32 %s248_s12, 4  ;;  %s26_s15 = sshll.u32 %s249_s14, 4  ;;  %s18_s13 = int_to_ptr.vmem [resolvable:$true] %s17_s13  ;;  %s276_s15 = int_to_ptr.vmem [resolvable:$true] %s26_s15 }
   0x4   :  { %s176_s18 = scalar_lea.hbm %s322_s0, 128 }
   0x5   :  { %p177_p0 = scmp.ne.s32.totalorder %s322_s0, %s176_s18  ;;  %p180_p1 = scmp.lt.u32.totalorder %s176_s18, %s322_s0 }
   0x7   :  { %p182_p2 = pnand %p180_p1, %p177_p0 }
   0x9   :  { %185 = shalt.err (!%p182_p2)
}
   0xa   :  { %s186_s23 = scalar_lea.vmem %s18_s13, 128  ;;  %p191_p4 = scmp.lt.s32.totalorder %s18_s13, %s18_s13 }
   0xb   :  { %p187_p3 = scmp.ne.s32.totalorder %s18_s13, %s186_s23  ;;  %p192_p5 = scmp.lt.s32.totalorder %s186_s23, %s186_s23 }
   0xd   :  { %p193_p6 = por %p192_p5, %p191_p4 }
   0xf   :  { %p194_p7 = pnand %p193_p6, %p187_p3 }
  0x11   :  { %197 = shalt.err (!%p194_p7)
}
  0x12   :  { %20 = dma.hbm_to_vmem [thread:$0]  %s322_s0, 128, %s18_s13, [#allocation3]  }
  0x13   :  { %s198_s28 = scalar_lea.hbm %s323_s1, 512 }
  0x14   :  { %p199_p8 = scmp.ne.s32.totalorder %s323_s1, %s198_s28  ;;  %p202_p9 = scmp.lt.u32.totalorder %s198_s28, %s323_s1 }
  0x16   :  { %p204_p10 = pnand %p202_p9, %p199_p8 }
  0x18   :  { %207 = shalt.err (!%p204_p10)
}
  0x19   :  { %s208_s6 = scalar_lea.vmem %s276_s15, 512  ;;  %p213_p12 = scmp.lt.s32.totalorder %s276_s15, %s276_s15 }
  0x1a   :  { %p209_p11 = scmp.ne.s32.totalorder %s276_s15, %s208_s6  ;;  %p214_p13 = scmp.lt.s32.totalorder %s208_s6, %s208_s6 }
  0x1c   :  { %p215_p0 = por %p214_p13, %p213_p12 }
  0x1e   :  { %p216_p1 = pnand %p215_p0, %p209_p11 }
  0x20   :  { %219 = shalt.err (!%p216_p1)
}
  0x21   :  { %s250_s0 = smov 128   ;;  %s251_s7 = smov 8  }
  0x22   :  { %32 = dma.hbm_to_vmem [thread:$0]  %s323_s1, 512, %s276_s15, [#allocation6], %s250_s0, %s250_s0, %s251_s7  }
  0x23   :  { %242 = dma.done.wait [#allocation3], 128  }
  0x24   :  { %243 = vsyncadd [#allocation3], 4294967168 }
  0x25   :  { %244 = dma.done.wait [#allocation6], 512  }
  0x26   :  { %245 = vsyncadd [#allocation6], 4294966784  ;;  %v252_v0 = vmov 0.0|0.0   ;;  %vm253_vm0 = vmmov 0   ;;  %v254_v1 = vmov 0.0   ;;  %v42_v2 = vld [vmem:[#allocation5] sm:$0xff] }
  0x27   :  { %162 = vmatprep.subr.bf16.mxu0 %v252_v0  ;;  %159 = vmatprep.mubr.msk.f32.mxu0 %vm253_vm0, %v254_v1  ;;  %v43_v3 = vld [vmem:[#allocation5 + $0x8] sm:$0xff]  ;;  %v44_v4 = vld [vmem:[#allocation5 + $0x10] sm:$0xff]  ;;  %v45_v6 = vld [vmem:[#allocation5 + $0x18] sm:$0xff]  ;;  %vm53_vm1 = vcmask 261120   ;;  %s255_s11 = smov [#allocation7]  }
  0x28   :  { %v163_v5 = vpack.c.bf16 %v43_v3, %v42_v2  ;;  %v166_v7 = vpack.c.bf16 %v45_v6, %v44_v4  ;;  %v41_v8 = vld [vmem:[#allocation2] sm:$0xff]  ;;  %s134_s12 = sshll.u32 %s255_s11, 4  ;;  %s135_s12 = int_to_ptr.vmem [resolvable:$true] %s134_s12 }
  0x29   :  { %v144_v9 = vld [vmem:[%s324_s2] ss:$0 sm:$0xff]  ;;  %s220_s13 = scalar_lea.vmem %s135_s12, 128  ;;  %p225_p3 = scmp.lt.s32.totalorder %s135_s12, %s135_s12 }
  0x2a   :  { %164 = vmatpush3.bf16.msra.mxu0 %v163_v5  ;;  %p221_p2 = scmp.ne.s32.totalorder %s135_s12, %s220_s13  ;;  %p226_p4 = scmp.lt.s32.totalorder %s220_s13, %s220_s13 }
  0x2b   :  { %165 = vmatprep.subr.bf16.mxu0 %v252_v0 }
  0x2c   :  { %p227_p5 = por %p226_p4, %p225_p3 }
  0x2e   :  { %167 = vmatpush3.bf16.msra.mxu0 %v166_v7  ;;  %p228_p6 = pnand %p227_p5, %p221_p2 }
  0x31   :  { %160 = vmatmul.mubr.msk.f32.vlgmr.msra.gmra.mrb[0].mxu0 %vm53_vm1, %v41_v8 }
 0x104   :  { %v123_v10 = vpop.f32.mrb[0].mxu0 }
 0x105   :  { %v124_v11 = vadd.f32 %v144_v9, %v123_v10  ;;  %v161_v12 = vpop.f32.mrb[1].mxu0 }
 0x107   :  { %127 = vst [vmem:[#allocation7] sm:$0xff] %v124_v11 }
 0x108   :  { %231 = shalt.err (!%p228_p6)
}
 0x109   :  { %s232_s16 = scalar_lea.hbm %s325_s3, 128 }
 0x10a   :  { %p233_p7 = scmp.ne.s32.totalorder %s325_s3, %s232_s16  ;;  %p236_p8 = scmp.lt.u32.totalorder %s232_s16, %s325_s3 }
 0x10c   :  { %p238_p9 = pnand %p236_p8, %p233_p7 }
 0x10e   :  { %241 = shalt.err (!%p238_p9)
}
 0x10f   :  { %137 = dma.vmem_to_hbm [thread:$0]  %s135_s12, 128, %s325_s3, [#allocation4]  }
 0x110   :  { %246 = dma.done.wait [#allocation4], 128  }
 0x111   :  { %247 = vsyncadd [#allocation4], 4294967168 }
 0x112   :  { %141 = vsyncpa [#allocation3], 1 }
 0x113   :  { %142 = vsyncpa [#allocation6], 1 }
 0x114   :  { %143 = vsyncpa [#allocation4], 1 }

</bundles_post_ra>
